<compile_context>
chip_gen: v5e
topology: v5e:2x2
jax: 0.10.0
libtpu: 0.0.40
codegen_flags: <defaults>
</compile_context>

<pallas_src>
import numpy as np
import jax
import jax.numpy as jnp
from jax.experimental import pallas as pl
from jax.experimental.pallas import tpu as pltpu


def _round_up(x, m):
    return ((x + m - 1) // m) * m


def _eye(n, dtype=jnp.float32):
    r = jax.lax.broadcasted_iota(jnp.int32, (n, n), 0)
    c = jax.lax.broadcasted_iota(jnp.int32, (n, n), 1)
    return (r == c).astype(dtype)


def _vmem_budget_and_limit():
    """Generation-aware VMEM sizing. Conservative 64 MiB fallback is v7x-safe."""
    cap = 64 << 20
    try:
        if jax.devices()[0].platform == "tpu":
            cap = int(pltpu.get_tpu_info().vmem_capacity_bytes)
    except Exception:
        pass
    return int(cap * 0.40), int(cap * 0.75)   # (tiling budget, compiler vmem limit)


def _pick_batch_tile(b, n_pad, fin_pad, fout_pad, k, itemsize, budget_bytes,
                     max_unroll=8):
    """Largest divisor of the batch that fits the VMEM budget (incl. output slab, W and
    the projection slab), capped at B//2 so the parallel grid has >=2 steps (v7x)."""
    per_b = (2 * itemsize * n_pad * n_pad        # adj column block (double buffered)
             + 4 * n_pad * n_pad                 # f32 A' working slice
             + 2 * itemsize * n_pad * fin_pad    # feat block (double buffered)
             + 2 * 4 * n_pad * fout_pad          # output slab block (double buffered)
             + itemsize * k * n_pad * fin_pad    # projection slab scratch
             + 4 * 4 * n_pad * fin_pad)          # f32 recursion carries / temps
    fixed = (2 * itemsize * n_pad * n_pad        # A (double buffered)
             + itemsize * k * fin_pad * fout_pad  # fused W
             + 8 * fout_pad)                     # bias
    cap = max(1, (budget_bytes - fixed) // max(per_b, 1))
    bt = int(min(b, max_unroll, max(1, b // 2), cap))
    bt = max(bt, 1)
    while b % bt:
        bt -= 1
    return bt


def _make_laplacian_kernel(bt):
    """L_b = I - D^{-1/2} relu(A @ adj_b + bias_A) D^{-1/2} on unpadded shapes.

    Only used on the lambda_max=None path to feed the host eigendecomposition (off the
    perf-critical path: the host eig dominates), so it stays simple f32 per-batch."""
    def kernel(a_param_ref, bias_a_ref, adj_ref, l_ref):
        n = adj_ref.shape[1]
        eye = _eye(n)                              # hoisted out of the batch loop
        a = a_param_ref[...]
        bias_a = bias_a_ref[0]                     # SMEM scalar
        for b in range(bt):
            ap = jnp.dot(a, adj_ref[b], preferred_element_type=jnp.float32) + bias_a
            ap = jnp.maximum(ap, 0.0)
            deg = jnp.sum(ap, axis=1, keepdims=True)             # (N, 1)
            inv = jax.lax.rsqrt(jnp.maximum(deg, 1.0))           # (N, 1)
            inv_row = jnp.sum(eye * inv, axis=0, keepdims=True)  # (1, N) == inv^T
            l_ref[b] = eye - (inv * ap) * inv_row                # broadcast scaling
    return kernel


def _make_fused_kernel(k, bt, n_pad, n_real, fin_pad):
    """Fused forward: wide A'-build + implicit scaled-Laplacian action + Chebyshev
    recursion streamed into a projection slab + one fused slab matmul."""
    masked = n_pad != n_real

    def kernel(a_ref, bias_a_ref, lam_ref, adj_ref, feat_ref, w_ref, bias_ref,
               o_ref, slab_ref):
        # a_ref   : (N_pad, N_pad)            shared, compute dtype
        # adj_ref : (N_pad, Bt*N_pad)         folded batch along lanes
        # feat_ref: (Bt*N_pad, Fin_pad)       folded batch along sublanes
        # w_ref   : (K*Fin_pad, Fout_pad)     fused Chebyshev weights
        # slab_ref: (Bt*N_pad, K*Fin_pad)     VMEM scratch holding all Y_i
        bias_a = bias_a_ref[0]                                  # SMEM scalar
        base = pl.program_id(0) * bt
        dot_dtype = a_ref.dtype

        # A'-build: ONE wide matmul across the folded batch (A stays in MXU weights).
        ap_wide = jnp.dot(a_ref[...], adj_ref[...], preferred_element_type=jnp.float32)
        ap_wide = jnp.maximum(ap_wide + bias_a, 0.0)

        if masked:
            col = jax.lax.broadcasted_iota(jnp.int32, (n_pad, n_pad), 1)
            colmask = col < n_real                               # hoisted, reused per b

        for b in range(bt):
            ap = ap_wide[:, b * n_pad:(b + 1) * n_pad]           # lane-aligned slice
            if masked:
                ap = jnp.where(colmask, ap, 0.0)                 # zero padded columns
            deg = jnp.sum(ap, axis=1, keepdims=True)             # (N_pad, 1)
            inv = jax.lax.rsqrt(jnp.maximum(deg, 1.0))           # (N_pad, 1)
            ap_c = ap.astype(dot_dtype)
            c = lam_ref[base + b]                                # 2/lambda_max (SMEM)

            # L^ @ y = (2/lam - 1) * y - (2/lam) * inv * (A' @ (inv * y))
            def apply_l_hat(y, ap_c=ap_c, inv=inv, c=c):
                t = jnp.dot(ap_c, (inv * y).astype(dot_dtype),
                            preferred_element_type=jnp.float32)
                return (c - 1.0) * y - c * (inv * t)

            rows = pl.ds(b * n_pad, n_pad)
            # Bounded live range: only y_prev / y_cur are carried; each Y_i is consumed
            # into the slab scratch as soon as it is produced.
            y_prev = feat_ref[rows, :].astype(jnp.float32)       # Y_0 = feat  (f32 carry)
            slab_ref[rows, pl.ds(0, fin_pad)] = y_prev.astype(slab_ref.dtype)
            if k >= 2:
                y_cur = apply_l_hat(y_prev)                      # Y_1 = L^ @ feat
                slab_ref[rows, pl.ds(fin_pad, fin_pad)] = y_cur.astype(slab_ref.dtype)
                for i in range(2, k):
                    y_prev, y_cur = y_cur, 2.0 * apply_l_hat(y_cur) - y_prev
                    slab_ref[rows, pl.ds(i * fin_pad, fin_pad)] = (
                        y_cur.astype(slab_ref.dtype))

        # One fused projection: (Bt*N_pad, K*Fin_pad) @ (K*Fin_pad, Fout_pad) + bias,
        # stored as a single lane-dense slab.
        acc = jnp.dot(slab_ref[...], w_ref[...], preferred_element_type=jnp.float32)
        o_ref[...] = (acc + bias_ref[...]).astype(o_ref.dtype)

    return kernel


def dynamic_cheb_conv(adj, feat, A_param, bias_A, W, bias=None, lambda_max=None,
                      compute_dtype=jnp.float32):
    """Forward of DynamicChebConv. compute_dtype=jnp.bfloat16 halves HBM/VMEM traffic
    of adj/A/W/feat for large graphs (MXU operands); f32 default matches the reference
    closely (recursion carries and normalization are always f32)."""
    adj = jnp.asarray(adj, jnp.float32)
    feat = jnp.asarray(feat, jnp.float32)
    A_param = jnp.asarray(A_param, jnp.float32)
    W = jnp.asarray(W, jnp.float32)
    B, N, _ = adj.shape
    K, Fin, Fout = W.shape
    bias_a_arr = jnp.asarray(bias_A, jnp.float32).reshape(1)
    bias_vec = (jnp.zeros((Fout,), jnp.float32) if bias is None
                else jnp.asarray(bias, jnp.float32).reshape(Fout))

    # Lane-dense padded sizes (128 works on all generations; v6e/v7x MXU is 256-wide
    # but 128-aligned tiles still pack cleanly).
    N_pad = _round_up(N, 128)
    Fin_pad = _round_up(Fin, 128)
    Fout_pad = _round_up(Fout, 128)
    itemsize = jnp.dtype(compute_dtype).itemsize

    budget, vmem_limit = _vmem_budget_and_limit()
    Bt = _pick_batch_tile(B, N_pad, Fin_pad, Fout_pad, K, itemsize, budget)
    grid = (B // Bt,)
    smem_spec = pl.BlockSpec(memory_space=pltpu.MemorySpace.SMEM)
    cparams = pltpu.CompilerParams(dimension_semantics=("parallel",),
                                   vmem_limit_bytes=vmem_limit)

    if lambda_max is None:
        # TODO(synk): general (non-symmetric) eigendecomposition has no Pallas/TPU
        # equivalent; L comes from a small f32 Pallas kernel on the ORIGINAL (unpadded)
        # shapes and eigenvalues are taken on the host (mirrors th.linalg.eig). Pass
        # lambda_max explicitly (e.g. 2.0) to stay fully on-device / jit-friendly.
        L = pl.pallas_call(
            _make_laplacian_kernel(Bt),
            out_shape=jax.ShapeDtypeStruct((B, N, N), jnp.float32),
            grid=grid,
            in_specs=[
                pl.BlockSpec((N, N), lambda i: (0, 0)),           # A (shared)
                smem_spec,                                        # bias_A (SMEM)
                pl.BlockSpec((Bt, N, N), lambda i: (i, 0, 0)),    # adj batch block
            ],
            out_specs=pl.BlockSpec((Bt, N, N), lambda i: (i, 0, 0)),
            compiler_params=cparams,
        )(A_param, bias_a_arr, adj)
        lam = np.linalg.eigvals(np.asarray(jax.device_get(L))).real.max(axis=-1)
        lambda_max = jnp.asarray(lam, jnp.float32)

    lam_flat = jnp.asarray(lambda_max, jnp.float32).reshape(-1)
    if lam_flat.shape[0] == 1:
        lam_flat = jnp.broadcast_to(lam_flat, (B,))
    two_over_lam = (2.0 / lam_flat).astype(jnp.float32)    # kernel only multiplies

    # --- layout plumbing: zero-pad and fold the batch (lane-dense last dims) ---
    adj_p = jnp.zeros((B, N_pad, N_pad), jnp.float32).at[:, :N, :N].set(adj)
    adj_wide = (jnp.transpose(adj_p, (1, 0, 2))
                .reshape(N_pad, B * N_pad).astype(compute_dtype))      # batch along lanes
    feat_p = jnp.zeros((B, N_pad, Fin_pad), jnp.float32).at[:, :N, :Fin].set(feat)
    feat_fold = feat_p.reshape(B * N_pad, Fin_pad).astype(compute_dtype)
    A_p = (jnp.zeros((N_pad, N_pad), jnp.float32).at[:N, :N].set(A_param)
           .astype(compute_dtype))
    W_p = jnp.zeros((K, Fin_pad, Fout_pad), jnp.float32).at[:, :Fin, :Fout].set(W)
    W2 = W_p.reshape(K * Fin_pad, Fout_pad).astype(compute_dtype)      # fused weights
    bias_p = jnp.zeros((1, Fout_pad), jnp.float32).at[0, :Fout].set(bias_vec)

    out_fold = pl.pallas_call(
        _make_fused_kernel(K, Bt, N_pad, N, Fin_pad),
        out_shape=jax.ShapeDtypeStruct((B * N_pad, Fout_pad), jnp.float32),
        grid=grid,
        in_specs=[
            pl.BlockSpec((N_pad, N_pad), lambda i: (0, 0)),             # A (shared)
            smem_spec,                                                  # bias_A (SMEM)
            smem_spec,                                                  # 2/lambda (SMEM)
            pl.BlockSpec((N_pad, Bt * N_pad), lambda i: (0, i)),        # adj, lane-folded
            pl.BlockSpec((Bt * N_pad, Fin_pad), lambda i: (i, 0)),      # feat, row-folded
            pl.BlockSpec((K * Fin_pad, Fout_pad), lambda i: (0, 0)),    # fused W (shared)
            pl.BlockSpec((1, Fout_pad), lambda i: (0, 0)),              # bias (shared)
        ],
        out_specs=pl.BlockSpec((Bt * N_pad, Fout_pad), lambda i: (i, 0)),
        scratch_shapes=[pltpu.VMEM((Bt * N_pad, K * Fin_pad), compute_dtype)],
        compiler_params=cparams,
    )(A_p, bias_a_arr, two_over_lam, adj_wide, feat_fold, W2, bias_p)

    return out_fold.reshape(B, N_pad, Fout_pad)[:, :N, :Fout]


def reference(adj, feat, A_param, bias_A, W, bias):
    """Pure JAX/numpy reference mirroring the PyTorch forward."""
    A = jnp.einsum('ij,bjk->bik', A_param, adj) + bias_A
    A = jnp.maximum(A, 0.0)
    B, N, _ = A.shape
    deg = jnp.maximum(A.sum(axis=2), 1.0)
    inv = 1.0 / jnp.sqrt(deg)
    D = jax.vmap(jnp.diag)(inv)
    I = jnp.broadcast_to(jnp.eye(N), (B, N, N))
    L = I - D @ A @ D
    lam = np.linalg.eigvals(np.asarray(L)).real.max(axis=-1)
    lambda_max = jnp.asarray(lam, jnp.float32).reshape(B, 1, 1)
    L_hat = 2 * L / lambda_max - I
    Z = [I]
    for i in range(1, W.shape[0]):
        if i == 1:
            Z.append(L_hat)
        else:
            Z.append(2 * L_hat @ Z[-1] - Z[-2])
    Zs = jnp.stack(Z, 1)
    Zh = jnp.matmul(Zs @ feat[:, None], W)
    return Zh.sum(1) + bias


if __name__ == "__main__":
    B, N = 2, 16            # batch, num_nodes
    Fin, Fout, K = 8, 8, 3  # in_feats, out_feats, k

    key = jax.random.PRNGKey(0)
    kA, kbA, kW, kadj, kfeat = jax.random.split(key, 5)

    # Deterministic parameter init following the module's reset_parameters intent.
    A_param = 0.3 * jax.random.truncated_normal(kA, -2.0, 2.0, (N, N), jnp.float32)
    bias_A = 0.1 * jax.random.truncated_normal(kbA, -2.0, 2.0, (1,), jnp.float32)
    xavier_std = float(np.sqrt(2.0) * np.sqrt(2.0 / (Fin + Fout)))  # gain('relu')
    W = xavier_std * jax.random.normal(kW, (K, Fin, Fout), jnp.float32)
    bias = jnp.zeros((Fout,), jnp.float32)

    adj = jax.random.uniform(kadj, (B, N, N), jnp.float32)
    feat = jax.random.normal(kfeat, (B, N, Fin), jnp.float32)

    out = dynamic_cheb_conv(adj, feat, A_param, bias_A, W, bias)
    out = jax.block_until_ready(out)

    with jax.default_matmul_precision("highest"):
        ref = reference(adj, feat, A_param, bias_A, W, bias)
    np.testing.assert_allclose(np.asarray(out), np.asarray(ref), rtol=2e-2, atol=2e-2)

    print("KERNEL_OK")
</pallas_src>

<mosaic_0001>
module attributes {stable_mosaic.version = 11 : i64} {
  func.func @kernel(%arg0: i32, %arg1: memref<16x16xf32, #tpu.memory_space<vmem>>, %arg2: memref<1xf32, #tpu.memory_space<smem>>, %arg3: memref<1x16x16xf32, #tpu.memory_space<vmem>>, %arg4: memref<1x16x16xf32, #tpu.memory_space<vmem>>) attributes {dimension_semantics = [#tpu.dimension_semantics<parallel>], iteration_bounds = array<i64: 2>, scalar_prefetch = 0 : i64, scratch_operands = 0 : i64, tpu.core_type = #tpu.core_type<tc>, window_params = [{pipeline_mode = #tpu.pipeline_mode<synchronous>, transform_indices = @transform_0, window_bounds = array<i64: 16, 16>}, {transform_indices = @transform_1, window_bounds = array<i64: 1>}, {transform_indices = @transform_2, window_bounds = array<i64: 1, 16, 16>}, {transform_indices = @transform_3, window_bounds = array<i64: 1, 16, 16>}]} {
    %0 = tpu.iota {dimensions = array<i32: 0>} : vector<16x16xi32>
    %1 = tpu.iota {dimensions = array<i32: 1>} : vector<16x16xi32>
    %2 = arith.cmpi eq, %0, %1 : vector<16x16xi32>
    %3 = arith.extui %2 : vector<16x16xi1> to vector<16x16xi32>
    %4 = arith.sitofp %3 : vector<16x16xi32> to vector<16x16xf32>
    %c0 = arith.constant 0 : index
    %c0_0 = arith.constant 0 : index
    %5 = vector.load %arg1[%c0, %c0_0] : memref<16x16xf32, #tpu.memory_space<vmem>>, vector<16x16xf32>
    %c0_1 = arith.constant 0 : index
    %6 = memref.load %arg2[%c0_1] : memref<1xf32, #tpu.memory_space<smem>>
    %c0_2 = arith.constant 0 : index
    %c0_3 = arith.constant 0 : index
    %c0_4 = arith.constant 0 : index
    %7 = vector.load %arg3[%c0_2, %c0_3, %c0_4] : memref<1x16x16xf32, #tpu.memory_space<vmem>>, vector<1x16x16xf32>
    %8 = vector.shape_cast %7 : vector<1x16x16xf32> to vector<16x16xf32>
    %cst = arith.constant dense<0.000000e+00> : vector<16x16xf32>
    %9 = tpu.matmul %5, %8, %cst {dimension_numbers = #tpu.dot_dimension_numbers<[1], [0], [0], [1], [0, 0, 1, 1], [], []>} : vector<16x16xf32>, vector<16x16xf32>, vector<16x16xf32> -> vector<16x16xf32>
    %10 = vector.broadcast %6 : f32 to vector<16x16xf32>
    %11 = arith.addf %9, %10 : vector<16x16xf32>
    %cst_5 = arith.constant 0.000000e+00 : f32
    %12 = vector.broadcast %cst_5 : f32 to vector<16x16xf32>
    %13 = arith.maximumf %11, %12 : vector<16x16xf32>
    %cst_6 = arith.constant dense<0.000000e+00> : vector<16xf32>
    %14 = vector.multi_reduction <add>, %13, %cst_6 [1] : vector<16x16xf32> to vector<16xf32>
    %15 = vector.shape_cast %14 : vector<16xf32> to vector<16x1xf32>
    %cst_7 = arith.constant 1.000000e+00 : f32
    %16 = vector.broadcast %cst_7 : f32 to vector<16x1xf32>
    %17 = arith.maximumf %15, %16 : vector<16x1xf32>
    %18 = math.rsqrt %17 : vector<16x1xf32>
    %19 = vector.broadcast %18 : vector<16x1xf32> to vector<16x16xf32>
    %20 = arith.mulf %4, %19 : vector<16x16xf32>
    %cst_8 = arith.constant dense<0.000000e+00> : vector<16xf32>
    %21 = vector.multi_reduction <add>, %20, %cst_8 [0] : vector<16x16xf32> to vector<16xf32>
    %22 = vector.shape_cast %21 : vector<16xf32> to vector<1x16xf32>
    %23 = vector.broadcast %18 : vector<16x1xf32> to vector<16x16xf32>
    %24 = arith.mulf %23, %13 : vector<16x16xf32>
    %25 = vector.broadcast %22 : vector<1x16xf32> to vector<16x16xf32>
    %26 = arith.mulf %24, %25 : vector<16x16xf32>
    %27 = arith.subf %4, %26 : vector<16x16xf32>
    %c0_9 = arith.constant 0 : index
    %c0_10 = arith.constant 0 : index
    %c0_11 = arith.constant 0 : index
    %28 = vector.load %arg4[%c0_9, %c0_10, %c0_11] : memref<1x16x16xf32, #tpu.memory_space<vmem>>, vector<1x16x16xf32>
    %29 = vector.shape_cast %28 : vector<1x16x16xf32> to vector<16x16xf32>
    %30 = vector.shape_cast %27 : vector<16x16xf32> to vector<1x16x16xf32>
    tpu.vector_store %arg4[%c0_9, %c0_10, %c0_11], %30 {strides = array<i32>} : memref<1x16x16xf32, #tpu.memory_space<vmem>>, vector<1x16x16xf32>,
    return
  }
  func.func @transform_0(%arg0: i32) -> (i32, i32) {
    %c0_i32 = arith.constant 0 : i32
    %c0_i32_0 = arith.constant 0 : i32
    %c0_i32_1 = arith.constant 0 : i32
    return %c0_i32, %c0_i32_0 : i32, i32
  }
  func.func @transform_1(%arg0: i32) -> i32 {
    %c0_i32 = arith.constant 0 : i32
    %c0_i32_0 = arith.constant 0 : i32
    return %c0_i32 : i32
  }
  func.func @transform_2(%arg0: i32) -> (i32, i32, i32) {
    %c0_i32 = arith.constant 0 : i32
    %c0_i32_0 = arith.constant 0 : i32
    %c0_i32_1 = arith.constant 0 : i32
    return %arg0, %c0_i32, %c0_i32_0 : i32, i32, i32
  }
  func.func @transform_3(%arg0: i32) -> (i32, i32, i32) {
    %c0_i32 = arith.constant 0 : i32
    %c0_i32_0 = arith.constant 0 : i32
    %c0_i32_1 = arith.constant 0 : i32
    return %arg0, %c0_i32, %c0_i32_0 : i32, i32, i32
  }
}

</mosaic_0001>

<bundles_post_ra>
// kernel: tpu_custom_call.1
= control target key start
LH: loop header
LB: loop body
LE: loop exit
PB: predicated region body
PF: predicated region fallthrough
CT: control target
= control target key end

     0   :  { %s813_s0 = inlined_call_operand.hbm [shape: f32[16,16], index: 0, kind: input, shape index: {}]   ;;  %s814_s1 = inlined_call_operand.<no memory space> [shape: f32[1], index: 1, kind: input, shape index: {}]   ;;  %s815_s2 = inlined_call_operand.hbm [shape: f32[2,16,16], index: 2, kind: input, shape index: {}]   ;;  %s816_s3 = inlined_call_operand.hbm [shape: f32[2,16,16], index: 3, kind: output, shape index: {}]  }
   0x1   :  { %8 = sst [smem:[#allocation2]] %s814_s1 }
   0x2   :  { %9 = vsyncpa [#allocation4], 0 }
   0x3   :  { %10 = vsyncpa [#allocation7], 0 }
   0x4   :  { %12 = vsyncpa [#allocation7 + $0x1], 0 }
   0x5   :  { %13 = vsyncpa [#allocation5], 0 }
   0x6   :  { %15 = vsyncpa [#allocation5 + $0x1], 0  ;;  %s657_s14 = smov 0   ;;  %s659_s15 = smov 0  }
   0x7   :  { %s661_s16 = smov 0   ;;  %s663_s17 = smov 0  }
   0x8 LB: > { %s678_s1 = sadd.s32 4294967295, %s626_s17   ;;  %s406_s18 = sadd.s32 4294967294, %s626_s17   ;;  %s626_s17 = sphi %s663_s17, %s826_s17   ;;  %s622_s16 = sphi %s661_s16, %s825_s16   ;;  %s618_s15 = sphi %s659_s15, %s824_s15   ;;  %s614_s14 = sphi %s657_s14, %s823_s14  }
   0x9   : > { %p83_p0 = scmp.ne.s32.totalorder %s618_s15, %s614_s14  ;;  %p84_p1 = scmp.eq.s32.totalorder %s678_s1, 0 }
   0xa   : > { %p107_p2 = scmp.eq.s32.totalorder %s678_s1, 1  ;;  %p113_p3 = scmp.eq.s32.totalorder %s406_s18, 1 }
   0xb   : > { %p687_p4 = por %p84_p1, %p83_p0  ;;  %p407_p5 = scmp.ge.s32.totalorder %s626_s17, 1 }
   0xc   : > { %p692_p6 = por %p113_p3, %p83_p0  ;;  %p120_p7 = scmp.lt.s32.totalorder %s626_s17, 3 }
   0xd   : > { %s131_s23 = sshll.u32 %s813_s0, 4  ;;  %s628_s25 = smov [#allocation3]   ;;  %s132_s23 = int_to_ptr.hbm [resolvable:$true] %s131_s23 }
   0xe   : > { %p700_p8 = pnand %p407_p5, %p120_p7  ;;  %s133_s26 = sshll.u32 %s628_s25, 4  ;;  %s134_s26 = int_to_ptr.vmem [resolvable:$true] %s133_s26 }
   0xf   : > { %s710_s27 = sadd.s32 1, %s626_s17   ;;  %s629_s28 = smov 128  }
  0x10   : > { %p438_p9 = pneg %p700_p8  ;;  %s630_s29 = smov 8  }
  0x11   : > { %s67_s30 = ssub.s32 %s626_s17, %s710_s27  ;;  %s70_s4 = sadd.s32 1, %s622_s16 }
  0x12   : > { %p439_p10 = pnand %p438_p9, %p84_p1  ;;  %p68_p12 = scmp.eq.s32.totalorder %s67_s30, 0 }
  0x13   : > { %p77_p13 = scmp.ne.s32.totalorder %s622_s16, %s618_s15  ;;  %p78_p0 = scmp.eq.s32.totalorder %s626_s17, 0 }
  0x14   : > { %441 = dma.hbm_to_vmem [thread:$0]  (!%p439_p10), %s132_s23, 256, %s134_s26, [#allocation4], %s629_s28, %s629_s28, %s630_s29  }
  0x15   : > { %s722_s5 = scalar_select %p68_p12, %s622_s16, %s70_s4  }
  0x16   : > { %p726_p3 = por %p107_p2, %p77_p13  ;;  %p451_p5 = scmp.lt.s32.totalorder %s626_s17, 2 }
  0x17   : > { %s150_s7 = sand.u32 1, %s622_s16   ;;  %s426_s8 = sshll.u32 %s626_s17, 4 }
  0x18   : > { %p79_p7 = por %p78_p0, %p77_p13  ;;  %s410_s9 = sshll.u32 %s150_s7, 4 }
  0x19   : > { %s159_s12 = scalar_lea.hbm %s815_s2, %s426_s8  ;;  %s154_s18 = scalar_lea.vmem [#allocation6], %s410_s9 }
  0x1a   : > { %s160_s13 = sshll.u32 %s159_s12, 4  ;;  %s162_s21 = sshll.u32 %s154_s18, 4  ;;  %s161_s13 = int_to_ptr.hbm [resolvable:$true] %s160_s13  ;;  %s163_s21 = int_to_ptr.vmem [resolvable:$true] %s162_s21 }
  0x1b   : > { %p736_p9 = pnand %p451_p5, %p79_p7  ;;  %s151_s23 = scalar_lea.sflag [#allocation7], %s150_s7 }
  0x1c   : > { %s526_s25 = sshra.s32 %s161_s13, 4  ;;  %s533_s8 = scalar_lea.hbm %s815_s2, 32  ;;  %s527_s25 = int_to_ptr.hbm [resolvable:$true] %s526_s25 }
  0x1d   : > { %s528_s26 = scalar_lea.hbm %s527_s25, 16  ;;  %p530_p10 = pneg %p736_p9 }
  0x1e   : > { %p529_p2 = scmp.ne.s32.totalorder %s527_s25, %s528_s26  ;;  %p534_p0 = scmp.lt.s32.totalorder %s527_s25, %s815_s2 }
  0x1f   : > { %p535_p5 = scmp.lt.s32.totalorder %s533_s8, %s528_s26 }
  0x20   : > { %p531_p12 = pnand %p530_p10, %p529_p2 }
  0x21   : > { %p536_p7 = por %p535_p5, %p534_p0 }
  0x22   : > { %p532_p13 = pneg %p531_p12 }
  0x24   : > { %p537_p11 = pnand %p536_p7, %p532_p13 }
  0x26   : > { %540 = shalt.err (!%p537_p11)
}
  0x27   : > { %445 = dma.hbm_to_vmem [thread:$0]  (!%p736_p9), %s161_s13, 256, %s163_s21, %s151_s23, %s629_s28, %s629_s28, %s630_s29  }
  0x28   : > { %174 = sbr.rel (%p700_p8) target bundleno = 355 (0x163), region = 32 }
  0x2d   : > { %601 = dma.done.wait (%p84_p1), [#allocation4], 256  }
  0x2e   : > { %603 = vsyncadd (%p84_p1), [#allocation4], 4294967040  ;;  %s760_s7 = sand.u32 1, %s618_s15  }
  0x2f   : > { %s415_s11 = sshll.u32 %s760_s7, 4  ;;  %s182_s12 = scalar_lea.sflag [#allocation7], %s760_s7 }
  0x30   : > { %s185_s28 = scalar_lea.vmem [#allocation6], %s415_s11 }
  0x31   : > { %605 = dma.done.wait (%p687_p4), %s182_s12, 256  }
  0x32   : > { %607 = vsyncadd (%p687_p4), %s182_s12, 4294967040  ;;  %v224_v0 = vld [vmem:[%s185_s28 + $0x8] sm:$0xff]  ;;  %v223_v1 = vld [vmem:[%s185_s28] sm:$0xff]  ;;  %vm226_vm0 = vcmask 130048   ;;  %s222_s24 = sld [smem:[#allocation2]]  ;;  %v209_v20 = vlaneseq  ;;  %v631_v31 = vmov 0.0  }
  0x33   : > { %247 = vmatpush.msra.mxu0 %v224_v0  ;;  %v220_v2 = vld [vmem:[#allocation3] sm:$0xff]  ;;  %428 = vmatpush.msra.mxu1 %v224_v0  ;;  %v221_v3 = vld [vmem:[#allocation3 + $0x8] sm:$0xff]  ;;  %s427_s19 = sshll.u32 %s678_s1, 4  ;;  %s208_s21 = scalar_lea.vmem [#allocation8], %s415_s11 }
  0x34   : > { %v210_v24 = vshrl.u32 %v209_v20, 7  ;;  %v213_v25 = vand.u32 127, %v209_v20  ;;  %s317_s18 = scalar_lea.hbm %s816_s3, %s427_s19  ;;  %s318_s22 = sshll.u32 %s208_s21, 4  ;;  %s319_s22 = int_to_ptr.vmem [resolvable:$true] %s318_s22 }
  0x35   : > { %248 = vmatpush.msra.mxu0 %v223_v1  ;;  %429 = vmatpush.msra.mxu1 %v223_v1  ;;  %s320_s23 = sshll.u32 %s317_s18, 4  ;;  %s306_s1 = scalar_lea.sflag [#allocation5], %s760_s7  ;;  %s321_s23 = int_to_ptr.hbm [resolvable:$true] %s320_s23 }
  0x36   : > { %419 = vmatmul.msk.f32.vlgmr.msra.gmra.mxu0 %vm226_vm0, %v220_v2  ;;  %420 = vmatmul.msk.f32.vlgmr.msra.gmra.mxu1 %vm226_vm0, %v221_v3  ;;  %v211_v27 = vadd.s32 8, %v210_v24  ;;  %vm214_vm2 = vcmp.eq.s32.totalorder %v210_v24, %v213_v25  ;;  %s570_s25 = sshra.s32 %s321_s23, 4  ;;  %s576_s8 = scalar_lea.hbm %s816_s3, 32  ;;  %s571_s25 = int_to_ptr.hbm [resolvable:$true] %s570_s25 }
  0x37   : > { %v417_v32 = vsel %vm214_vm2, 1.0, %v631_v31  ;;  %s572_s26 = scalar_lea.hbm %s571_s25, 16  ;;  %p577_p11 = scmp.lt.s32.totalorder %s571_s25, %s816_s3 }
  0x38   : > { %v225_v4 = vstv %s222_s24  ;;  %vm215_vm5 = vcmp.eq.s32.totalorder %v211_v27, %v213_v25  ;;  %p573_p1 = scmp.ne.s32.totalorder %s571_s25, %s572_s26  ;;  %p578_p9 = scmp.lt.s32.totalorder %s576_s8, %s572_s26 }
  0x39   : > { %v418_v35 = vsel %vm215_vm5, 1.0, %v631_v31 }
  0x3a   : > { %p574_p4 = pnand %p573_p1, %p726_p3  ;;  %p579_p2 = por %p578_p9, %p577_p11 }
  0x3c   : > { %p575_p8 = pneg %p574_p4 }
  0x3e   : > { %p580_p10 = pnand %p579_p2, %p575_p8 }
  0xb3   : > { %v250_v5 = vpop.f32.mrf.mxu0  ;;  %v253_v6 = vpop.f32.mrf.mxu1 }
  0xb4   : > { %v251_v7 = vadd.f32 %v250_v5, %v225_v4  ;;  %v254_v9 = vadd.f32 %v253_v6, %v225_v4 }
  0xb6   : > { %v256_v8 = vmax.f32 %v251_v7, 0.0  ;;  %v257_v11 = vmax.f32 %v254_v9, 0.0 }
  0xb8   : > { %v258_v10 = vsel %vm226_vm0, %v256_v8, 0.0  ;;  %v261_v12 = vsel %vm226_vm0, %v257_v11, 0.0 }
  0xb9   : > { %259 = vadd.xlane.f32.xlu0 %v258_v10 }
  0xc1   : > { %262 = vadd.xlane.f32.xlu0 %v261_v12 }
 0x12c   : > { %v260_v13 = vpop.xlane.xlu0 %259 }
 0x12d   : > { %v264_v14 = vmax.f32 %v260_v13, 1.0 }
 0x12f   : > { %492 = vrsqrt.f32 %v264_v14  ;;  %vm272_vm3 = vweird.f32 %v264_v14 }
 0x134   : > { %v263_v15 = vpop.xlane.xlu0 %262 }
 0x135   : > { %v493_v16 = vpop.eup %492  ;;  %v265_v17 = vmax.f32 %v263_v15, 1.0 }
 0x136   : > { %v267_v18 = vmul.f32 %v493_v16, %v264_v14  ;;  %vm273_vm1 = vweird.f32 %v493_v16 }
 0x137   : > { %494 = vrsqrt.f32 %v265_v17  ;;  %vm274_vm4 = vmor %vm272_vm3, %vm273_vm1  ;;  %vm282_vm7 = vweird.f32 %v265_v17 }
 0x138   : > { %v268_v19 = vmul.f32 %v493_v16, %v267_v18 }
 0x13a   : > { %v269_v21 = vmul.f32 0.5, %v268_v19 }
 0x13c   : > { %v270_v22 = vsub.f32 1.5, %v269_v21 }
 0x13d   : > { %v495_v23 = vpop.eup %494 }
 0x13e   : > { %v277_v26 = vmul.f32 %v495_v23, %v265_v17  ;;  %v271_v28 = vmul.f32 %v493_v16, %v270_v22  ;;  %vm283_vm6 = vweird.f32 %v495_v23 }
 0x13f   : > { %vm284_vm8 = vmor %vm282_vm7, %vm283_vm6 }
 0x140   : > { %v278_v29 = vmul.f32 %v495_v23, %v277_v26  ;;  %v275_v33 = vsel %vm274_vm4, %v493_v16, %v271_v28 }
 0x141   : > { %v286_v37 = vmul.f32 %v417_v32, %v275_v33  ;;  %v297_v48 = vmul.f32 %v275_v33, %v256_v8 }
 0x142   : > { %v279_v30 = vmul.f32 0.5, %v278_v29 }
 0x143   : > { %v288_v40 = vsel %vm226_vm0, %v286_v37, 0.0 }
 0x144   : > { %v280_v34 = vsub.f32 1.5, %v279_v30 }
 0x146   : > { %v281_v36 = vmul.f32 %v495_v23, %v280_v34 }
 0x148   : > { %v285_v38 = vsel %vm284_vm8, %v495_v23, %v281_v36 }
 0x149   : > { %v287_v39 = vmul.f32 %v418_v35, %v285_v38  ;;  %v298_v50 = vmul.f32 %v285_v38, %v257_v11 }
 0x14b   : > { %v289_v41 = vsel %vm226_vm0, %v287_v39, 0.0 }
 0x14c   : > { %v290_v42 = vadd.f32 %v289_v41, %v288_v40 }
 0x14e   : > { %v291_v43 = vrot.slane %v290_v42, 4 }
 0x150   : > { %v292_v44 = vadd.f32 %v291_v43, %v290_v42 }
 0x152   : > { %v293_v45 = vrot.slane %v292_v44, 2 }
 0x154   : > { %v294_v46 = vadd.f32 %v293_v45, %v292_v44 }
 0x156   : > { %v295_v47 = vrot.slane %v294_v46, 1 }
 0x158   : > { %v296_v49 = vadd.f32 %v295_v47, %v294_v46 }
 0x15a   : > { %v299_v51 = vmul.f32 %v297_v48, %v296_v49  ;;  %v300_v52 = vmul.f32 %v298_v50, %v296_v49 }
 0x15c   : > { %v301_v53 = vsub.f32 %v417_v32, %v299_v51  ;;  %v302_v54 = vsub.f32 %v418_v35, %v300_v52 }
 0x15e   : > { %303 = vst.msk [vmem:[%s208_s21] sm:$0xff] %vm226_vm0, %v301_v53 }
 0x15f   : > { %304 = vst.msk [vmem:[%s208_s21 + $0x8] sm:$0xff] %vm226_vm0, %v302_v54 }
 0x160   : > { %583 = shalt.err (!%p580_p10)
}
 0x161   : > { %s632_s7 = smov 128   ;;  %s633_s11 = smov 8  }
 0x162   : > { %436 = dma.vmem_to_hbm [thread:$0]  (%p726_p3), %s319_s22, 256, %s321_s23, %s306_s1, %s632_s7, %s632_s7, %s633_s11  }
 0x163 PF: > { %s335_s12 = sand.u32 1, %s614_s14   ;;  %p822_p12 = scmp.ge.s32.totalorder %s626_s17, 2 }
 0x164   : > { %s336_s28 = scalar_lea.sflag [#allocation5], %s335_s12 }
 0x165   : > { %p447_p13 = pnand %p822_p12, %p692_p6 }
 0x167   : > { %p448_p0 = pneg %p447_p13 }
 0x169   : > { %609 = dma.done.wait (%p448_p0), %s336_s28, 256  }
 0x16a   : > { %611 = vsyncadd (%p448_p0), %s336_s28, 4294967040  ;;  %p18_p5 = scmp.ge.s32.totalorder %s710_s27, 4   ;;  %s823_s14 = smov %s618_s15 }
 0x16b   : > { %s824_s15 = smov %s622_s16  ;;  %s825_s16 = smov %s722_s5 }
 0x16c   : > { %s826_s17 = smov %s710_s27  ;;  %20 = sbr.rel (!%p18_p5) target bundleno = 8 (0x8), region = 82 }
 0x171   :  { %342 = vsyncpa [#allocation4], 1 }
 0x172   :  { %344 = vsyncpa [#allocation4 + $0x1], 1 }
 0x173   :  { %345 = vsyncpa [#allocation7], 1 }
 0x174   :  { %347 = vsyncpa [#allocation7 + $0x1], 1 }
 0x175   :  { %348 = vsyncpa [#allocation5], 1 }
 0x176   :  { %350 = vsyncpa [#allocation5 + $0x1], 1 }

</bundles_post_ra>
